<compile_context>
chip_gen: v7x
topology: tpu7x:2x2x1
jax: 0.10.0
libtpu: 0.0.40
codegen_flags: <defaults>
</compile_context>

<pallas_src>
import jax
import jax.numpy as jnp
from jax.experimental import pallas as pl
from jax.experimental.pallas import tpu as pltpu


def mlp_kernel(x_ref, w1_ref, b1_ref, w2_ref, b2_ref, o_ref, acc_ref):
    """One (batch-tile, H-chunk) grid step.

    x_ref  : (TB, D_in)  f32  (cast to bf16 on the VPU here)
    w1_ref : (D_in, TH)  bf16 (column chunk of W1)
    b1_ref : (1, TH)     f32
    w2_ref : (TH, D_out) bf16 (row chunk of W2)
    b2_ref : (1, D_out)  f32
    o_ref  : (TB, D_out) out dtype
    acc_ref: (TB, D_out) f32 scratch accumulator (persists across H chunks)
    """
    hc = pl.program_id(1)

    @pl.when(hc == 0)
    def _init():
        acc_ref[...] = jnp.zeros_like(acc_ref)

    xb = x_ref[...].astype(jnp.bfloat16)
    h = jnp.dot(xb, w1_ref[...], preferred_element_type=jnp.float32)
    h = jnp.maximum(h + b1_ref[...], 0.0)                      # bias + ReLU in f32
    acc_ref[...] += jnp.dot(h.astype(w2_ref.dtype), w2_ref[...],
                            preferred_element_type=jnp.float32)

    @pl.when(hc == pl.num_programs(1) - 1)
    def _finalize():
        o_ref[...] = (acc_ref[...] + b2_ref[...]).astype(o_ref.dtype)


def _vmem_limit_bytes(default=96 << 20):
    """~75% of this generation's VMEM (fallback 96 MiB; v5e/v6e have 128 MiB/TC).

    Clamped at 100 MiB; if a 2-TC part ever reports per-chip capacity this is
    still conservative relative to 2x64 MiB.  # TODO(synk): use chip version to
    pick an exact per-TensorCore figure once TpuInfo exposes it portably.
    """
    try:
        cap = getattr(pltpu.get_tpu_info(), "vmem_capacity_bytes", None)
    except Exception:
        cap = None
    if not cap:
        return default
    return min(int(cap) * 3 // 4, 100 << 20)


def _pick_tiles(B, D_in, H, D_out, vmem_limit):
    """Choose (TB, TH): batch tile and hidden-chunk size.

    * TB capped at ceil(B/2) (rounded up to 8) so the batch grid has >= 2
      steps whenever possible -> both v7x TensorCores get work.
    * TH = H when the bf16 weights fit resident in VMEM (read from HBM once);
      otherwise the largest lane-aligned divisor of H that fits (streaming).
    * Budget ~85% of vmem_limit, counting double-buffered blocks, the f32
      accumulator scratch, and in-kernel temporaries (bf16 x cast, f32 hidden,
      bf16 hidden copy, matmul result).
    """
    budget = int(vmem_limit * 0.85)

    def fits(tb, th):
        blocks = 2 * (tb * D_in * 4        # x (f32), double-buffered
                      + D_in * th * 2      # W1 chunk (bf16)
                      + th * 4             # b1 chunk (f32)
                      + th * D_out * 2     # W2 chunk (bf16)
                      + D_out * 4          # b2 (f32)
                      + tb * D_out * 4)    # out tile (f32)
        scratch = tb * D_out * 4                       # accumulator
        temps = tb * D_in * 2 + tb * th * (4 + 2) + tb * D_out * 4
        return blocks + scratch + temps <= budget

    if B > 8:
        max_tb = max(8, ((-(-B // 2)) + 7) // 8 * 8)   # ceil(B/2) rounded up to 8
    else:
        max_tb = B
    tb_cands = [t for t in (1024, 768, 512, 384, 256, 128, 64, 32, 16, 8)
                if t <= max_tb] or [max_tb]

    th_cands = [H] + [t for t in (4096, 2048, 1024, 512, 384, 256, 128)
                      if t < H and H % t == 0]

    best = None
    for th in th_cands:
        tb_fit = next((tb for tb in tb_cands if fits(tb, th)), None)
        if tb_fit is None:
            continue
        if best is None or tb_fit > best[0]:
            best = (tb_fit, th)
    if best is None:                                   # nothing fits: smallest config
        best = (tb_cands[-1], th_cands[-1])
    return best


def prepare_mlp_params(w1, b1, w2, b2):
    """One-time conversion (outside the hot path): bf16 matmul weights, f32 biases."""
    return (jnp.asarray(w1, jnp.bfloat16),
            jnp.asarray(b1, jnp.float32).reshape(1, -1),
            jnp.asarray(w2, jnp.bfloat16),
            jnp.asarray(b2, jnp.float32).reshape(1, -1))


def two_layer_mlp(x, params, *, tile_b=None, tile_h=None, out_dtype=jnp.float32):
    """x: [B, D_in] f32; params = prepare_mlp_params(...). Returns [B, D_out]."""
    w1, b1, w2, b2 = params
    B, D_in = x.shape
    H = w1.shape[1]
    D_out = w2.shape[1]

    vmem_limit = _vmem_limit_bytes()
    auto_tb, auto_th = _pick_tiles(B, D_in, H, D_out, vmem_limit)
    TB = tile_b if tile_b is not None else auto_tb
    TH = tile_h if tile_h is not None else auto_th

    grid = (pl.cdiv(B, TB), pl.cdiv(H, TH))

    return pl.pallas_call(
        mlp_kernel,
        out_shape=jax.ShapeDtypeStruct((B, D_out), out_dtype),
        grid=grid,
        in_specs=[
            pl.BlockSpec((TB, D_in), lambda i, hc: (i, 0)),    # x: reused across H chunks
            pl.BlockSpec((D_in, TH), lambda i, hc: (0, hc)),   # W1 column chunk
            pl.BlockSpec((1, TH), lambda i, hc: (0, hc)),      # b1 chunk
            pl.BlockSpec((TH, D_out), lambda i, hc: (hc, 0)),  # W2 row chunk
            pl.BlockSpec((1, D_out), lambda i, hc: (0, 0)),    # b2: resident
        ],
        out_specs=pl.BlockSpec((TB, D_out), lambda i, hc: (i, 0)),
        scratch_shapes=[pltpu.VMEM((TB, D_out), jnp.float32)],
        compiler_params=pltpu.CompilerParams(
            dimension_semantics=("parallel", "arbitrary"),     # 2-TC batch split on v7x
            vmem_limit_bytes=vmem_limit,
        ),
    )(x, w1, b1, w2, b2)


def init_params(key, input_dim, output_dim, dtype=jnp.float32):
    """Deterministic init mimicking PyTorch nn.Linear default (uniform +-1/sqrt(fan_in))."""
    hidden = input_dim * 2
    k1, k2, k3, k4 = jax.random.split(key, 4)
    bound1 = 1.0 / (input_dim ** 0.5)
    bound2 = 1.0 / (hidden ** 0.5)
    w1 = jax.random.uniform(k1, (input_dim, hidden), dtype, -bound1, bound1)
    b1 = jax.random.uniform(k2, (1, hidden), dtype, -bound1, bound1)
    w2 = jax.random.uniform(k3, (hidden, output_dim), dtype, -bound2, bound2)
    b2 = jax.random.uniform(k4, (1, output_dim), dtype, -bound2, bound2)
    return w1, b1, w2, b2


if __name__ == "__main__":
    # Scaled-down module dims: batch=256, input_dim=128 (hidden=256), output_dim=256.
    B, D_in, D_out = 256, 128, 256
    key = jax.random.PRNGKey(0)
    kx, kp = jax.random.split(key)
    x = jax.random.normal(kx, (B, D_in), jnp.float32)
    w1, b1, w2, b2 = init_params(kp, D_in, D_out)
    params = prepare_mlp_params(w1, b1, w2, b2)        # one-time bf16 conversion

    # Auto-tiled run: heuristic caps TB at 128 (2 batch grid steps) and keeps
    # the weights resident (TH == H == 256, single H chunk).
    out = jax.block_until_ready(two_layer_mlp(x, params))
    assert out.shape == (B, D_out)

    # Reference with identical bf16-matmul / f32-accumulate semantics.
    xb = x.astype(jnp.bfloat16)
    h_ref = jnp.maximum(
        jnp.dot(xb, params[0], preferred_element_type=jnp.float32) + params[1], 0.0)
    ref_bf = jnp.dot(h_ref.astype(jnp.bfloat16), params[2],
                     preferred_element_type=jnp.float32) + params[3]
    assert jnp.allclose(out, ref_bf, atol=2e-3, rtol=2e-3), \
        float(jnp.max(jnp.abs(out - ref_bf)))

    # Exercise the H-streaming accumulator path (4 batch tiles x 2 H chunks).
    out_stream = jax.block_until_ready(
        two_layer_mlp(x, params, tile_b=64, tile_h=128))
    assert jnp.allclose(out_stream, ref_bf, atol=2e-3, rtol=2e-3), \
        float(jnp.max(jnp.abs(out_stream - ref_bf)))

    # Loose sanity check vs. the pure-f32 reference (bf16 rounding error only).
    ref_f32 = jnp.maximum(x @ w1 + b1, 0.0) @ w2 + b2
    assert jnp.allclose(out, ref_f32, atol=5e-2, rtol=5e-2), \
        float(jnp.max(jnp.abs(out - ref_f32)))

    print("KERNEL_OK")
</pallas_src>

<mosaic_0001>
module attributes {stable_mosaic.version = 11 : i64} {
  func.func @mlp_kernel(%arg0: i32, %arg1: i32, %arg2: memref<128x128xf32, #tpu.memory_space<vmem>>, %arg3: memref<128x256xbf16, #tpu.memory_space<vmem>>, %arg4: memref<1x256xf32, #tpu.memory_space<vmem>>, %arg5: memref<256x256xbf16, #tpu.memory_space<vmem>>, %arg6: memref<1x256xf32, #tpu.memory_space<vmem>>, %arg7: memref<128x256xf32, #tpu.memory_space<vmem>>, %arg8: memref<128x256xf32, #tpu.memory_space<vmem>>) attributes {dimension_semantics = [#tpu.dimension_semantics<parallel>, #tpu.dimension_semantics<arbitrary>], iteration_bounds = array<i64: 2, 1>, scalar_prefetch = 0 : i64, scratch_operands = 1 : i64, tpu.core_type = #tpu.core_type<tc>, window_params = [{transform_indices = @transform_0, window_bounds = array<i64: 128, 128>}, {transform_indices = @transform_1, window_bounds = array<i64: 128, 256>}, {transform_indices = @transform_2, window_bounds = array<i64: 1, 256>}, {transform_indices = @transform_3, window_bounds = array<i64: 256, 256>}, {pipeline_mode = #tpu.pipeline_mode<synchronous>, transform_indices = @transform_4, window_bounds = array<i64: 1, 256>}, {transform_indices = @transform_5, window_bounds = array<i64: 128, 256>}]} {
    %c0_i32 = arith.constant 0 : i32
    %0 = arith.cmpi eq, %arg1, %c0_i32 : i32
    %1 = arith.extui %0 : i1 to i32
    %c0_i32_0 = arith.constant 0 : i32
    %2 = arith.cmpi ne, %1, %c0_i32_0 : i32
    scf.if %2 {
      %cst_16 = arith.constant 0.000000e+00 : f32
      %21 = vector.broadcast %cst_16 : f32 to vector<128x256xf32>
      %c0_17 = arith.constant 0 : index
      %c0_18 = arith.constant 0 : index
      %22 = vector.load %arg8[%c0_17, %c0_18] : memref<128x256xf32, #tpu.memory_space<vmem>>, vector<128x256xf32>
      tpu.vector_store %arg8[%c0_17, %c0_18], %21 {strides = array<i32>} : memref<128x256xf32, #tpu.memory_space<vmem>>, vector<128x256xf32>,
    } else {
    }
    %c0 = arith.constant 0 : index
    %c0_1 = arith.constant 0 : index
    %3 = vector.load %arg2[%c0, %c0_1] : memref<128x128xf32, #tpu.memory_space<vmem>>, vector<128x128xf32>
    %4 = arith.truncf %3 : vector<128x128xf32> to vector<128x128xbf16>
    %c0_2 = arith.constant 0 : index
    %c0_3 = arith.constant 0 : index
    %5 = vector.load %arg3[%c0_2, %c0_3] : memref<128x256xbf16, #tpu.memory_space<vmem>>, vector<128x256xbf16>
    %cst = arith.constant dense<0.000000e+00> : vector<128x256xf32>
    %6 = tpu.matmul %4, %5, %cst {dimension_numbers = #tpu.dot_dimension_numbers<[1], [0], [0], [1], [0, 0, 1, 1], [], []>} : vector<128x128xbf16>, vector<128x256xbf16>, vector<128x256xf32> -> vector<128x256xf32>
    %c0_4 = arith.constant 0 : index
    %c0_5 = arith.constant 0 : index
    %7 = vector.load %arg4[%c0_4, %c0_5] : memref<1x256xf32, #tpu.memory_space<vmem>>, vector<1x256xf32>
    %8 = vector.broadcast %7 : vector<1x256xf32> to vector<128x256xf32>
    %9 = arith.addf %6, %8 : vector<128x256xf32>
    %cst_6 = arith.constant 0.000000e+00 : f32
    %10 = vector.broadcast %cst_6 : f32 to vector<128x256xf32>
    %11 = arith.maximumf %9, %10 : vector<128x256xf32>
    %c0_7 = arith.constant 0 : index
    %c0_8 = arith.constant 0 : index
    %12 = vector.load %arg8[%c0_7, %c0_8] : memref<128x256xf32, #tpu.memory_space<vmem>>, vector<128x256xf32>
    %13 = arith.truncf %11 : vector<128x256xf32> to vector<128x256xbf16>
    %c0_9 = arith.constant 0 : index
    %c0_10 = arith.constant 0 : index
    %14 = vector.load %arg5[%c0_9, %c0_10] : memref<256x256xbf16, #tpu.memory_space<vmem>>, vector<256x256xbf16>
    %cst_11 = arith.constant dense<0.000000e+00> : vector<128x256xf32>
    %15 = tpu.matmul %13, %14, %cst_11 {dimension_numbers = #tpu.dot_dimension_numbers<[1], [0], [0], [1], [0, 0, 1, 1], [], []>} : vector<128x256xbf16>, vector<256x256xbf16>, vector<128x256xf32> -> vector<128x256xf32>
    %16 = arith.addf %12, %15 : vector<128x256xf32>
    %c0_12 = arith.constant 0 : index
    %c0_13 = arith.constant 0 : index
    %17 = vector.load %arg8[%c0_12, %c0_13] : memref<128x256xf32, #tpu.memory_space<vmem>>, vector<128x256xf32>
    tpu.vector_store %arg8[%c0_12, %c0_13], %16 {strides = array<i32>} : memref<128x256xf32, #tpu.memory_space<vmem>>, vector<128x256xf32>,
    %c0_i32_14 = arith.constant 0 : i32
    %18 = arith.cmpi eq, %arg1, %c0_i32_14 : i32
    %19 = arith.extui %18 : i1 to i32
    %c0_i32_15 = arith.constant 0 : i32
    %20 = arith.cmpi ne, %19, %c0_i32_15 : i32
    scf.if %20 {
      %c0_16 = arith.constant 0 : index
      %c0_17 = arith.constant 0 : index
      %21 = vector.load %arg8[%c0_16, %c0_17] : memref<128x256xf32, #tpu.memory_space<vmem>>, vector<128x256xf32>
      %c0_18 = arith.constant 0 : index
      %c0_19 = arith.constant 0 : index
      %22 = vector.load %arg6[%c0_18, %c0_19] : memref<1x256xf32, #tpu.memory_space<vmem>>, vector<1x256xf32>
      %23 = vector.broadcast %22 : vector<1x256xf32> to vector<128x256xf32>
      %24 = arith.addf %21, %23 : vector<128x256xf32>
      %c0_20 = arith.constant 0 : index
      %c0_21 = arith.constant 0 : index
      %25 = vector.load %arg7[%c0_20, %c0_21] : memref<128x256xf32, #tpu.memory_space<vmem>>, vector<128x256xf32>
      tpu.vector_store %arg7[%c0_20, %c0_21], %24 {strides = array<i32>} : memref<128x256xf32, #tpu.memory_space<vmem>>, vector<128x256xf32>,
    } else {
    }
    return
  }
  func.func @transform_0(%arg0: i32, %arg1: i32) -> (i32, i32) {
    %c0_i32 = arith.constant 0 : i32
    %c0_i32_0 = arith.constant 0 : i32
    return %arg0, %c0_i32 : i32, i32
  }
  func.func @transform_1(%arg0: i32, %arg1: i32) -> (i32, i32) {
    %c0_i32 = arith.constant 0 : i32
    %c0_i32_0 = arith.constant 0 : i32
    return %c0_i32, %arg1 : i32, i32
  }
  func.func @transform_2(%arg0: i32, %arg1: i32) -> (i32, i32) {
    %c0_i32 = arith.constant 0 : i32
    %c0_i32_0 = arith.constant 0 : i32
    return %c0_i32, %arg1 : i32, i32
  }
  func.func @transform_3(%arg0: i32, %arg1: i32) -> (i32, i32) {
    %c0_i32 = arith.constant 0 : i32
    %c0_i32_0 = arith.constant 0 : i32
    return %arg1, %c0_i32 : i32, i32
  }
  func.func @transform_4(%arg0: i32, %arg1: i32) -> (i32, i32) {
    %c0_i32 = arith.constant 0 : i32
    %c0_i32_0 = arith.constant 0 : i32
    %c0_i32_1 = arith.constant 0 : i32
    return %c0_i32, %c0_i32_0 : i32, i32
  }
  func.func @transform_5(%arg0: i32, %arg1: i32) -> (i32, i32) {
    %c0_i32 = arith.constant 0 : i32
    %c0_i32_0 = arith.constant 0 : i32
    return %arg0, %c0_i32 : i32, i32
  }
}

</mosaic_0001>

<bundles_post_ra>
// kernel: tpu_custom_call.1
= control target key start
LH: loop header
LB: loop body
LE: loop exit
PB: predicated region body
PF: predicated region fallthrough
CT: control target
= control target key end

     0   :  { %10 = vsyncpa [#allocation4], 0  ;;  %s2336_s0 = inlined_call_operand.hbm [shape: f32[256,128], index: 0, kind: input, shape index: {}]   ;;  %s2337_s1 = inlined_call_operand.hbm [shape: bf16[128,256], index: 1, kind: input, shape index: {}]   ;;  %s2338_s2 = inlined_call_operand.hbm [shape: f32[1,256], index: 2, kind: input, shape index: {}]   ;;  %s2339_s3 = inlined_call_operand.hbm [shape: bf16[256,256], index: 3, kind: input, shape index: {}]   ;;  %s2340_s4 = inlined_call_operand.hbm [shape: f32[1,256], index: 4, kind: input, shape index: {}]   ;;  %s2341_s5 = inlined_call_operand.hbm [shape: f32[256,256], index: 5, kind: output, shape index: {}]  }
   0x1   :  { %12 = vsyncpa [#allocation4 + $0x1], 0 }
   0x2   :  { %13 = vsyncpa [#allocation7], 0 }
   0x3   :  { %14 = vsyncpa [#allocation10], 0 }
   0x4   :  { %15 = vsyncpa [#allocation5], 0 }
   0x5   :  { %17 = vsyncpa [#allocation5 + $0x1], 0  ;;  %s1883_s18 = smov 0   ;;  %s1885_s19 = smov 0  }
   0x6   :  { %s1887_s20 = smov 0   ;;  %s1889_s21 = smov 0  }
   0x7   :  { %s1891_s22 = smov 0   ;;  %s1893_s23 = smov 0  }
   0x8 LB: > { %2348 = sst [smem:[#allocation17_spill]] %s1820_s18  ;;  %s1321_s24 = sadd.s32 4294967295, %s1840_s23   ;;  %s1840_s23 = sphi %s1893_s23, %s23_s23   ;;  %s1836_s22 = sphi %s1891_s22, %s2371_s22   ;;  %s1832_s21 = sphi %s1889_s21, %s2370_s21   ;;  %s1828_s20 = sphi %s1887_s20, %s2369_s20   ;;  %s1824_s19 = sphi %s1885_s19, %s2368_s19   ;;  %s1820_s18 = sphi %s1883_s18, %s2367_s18  }
   0x9   : > { %s1322_s25 = sadd.s32 4294967294, %s1840_s23   ;;  %p55_p0 = scmp.ne.s32.totalorder %s1824_s19, %s1820_s18 }
   0xa   : > { %p1917_p1 = scmp.eq.s32.totalorder %s1321_s24, 0  ;;  %p1921_p2 = scmp.eq.s32.totalorder %s1321_s24, 1 }
   0xb   : > { %p184_p3 = scmp.eq.s32.totalorder %s1322_s25, 1  ;;  %p1323_p5 = scmp.ge.s32.totalorder %s1840_s23, 1 }
   0xc   : > { %s2349_s26 = scalar_select %p1917_p1, 1, 0 }
   0xd   : > { %s2350_s27 = scalar_select %p1921_p2, 1, 0 }
   0xe   : > { %p1927_p4 = por %p1917_p1, %p55_p0  ;;  %p1932_p6 = por %p184_p3, %p55_p0 }
   0xf   : > { %p191_p7 = scmp.lt.s32.totalorder %s1840_s23, 3  ;;  %s1842_s6 = smov [#allocation6]  }
  0x10   : > { %s2351_s28 = scalar_select %p1927_p4, 1, 0 }
  0x11   : > { %s2352_s29 = scalar_select %p1932_p6, 1, 0 }
  0x12   : > { %p1937_p8 = pnand %p1323_p5, %p191_p7  ;;  %s206_s7 = sshll.u32 %s1842_s6, 4  ;;  %s1941_s7 = int_to_ptr.vmem [resolvable:$true] %s206_s7 }
  0x13   : > { %2353 = sst [smem:[#allocation18_spill]] %s2352_s29  ;;  %s1843_s9 = smov [#allocation9]  }
  0x14   : > { %s2354_s30 = scalar_select %p1937_p8, 1, 0 }
  0x15   : > { %p1448_p9 = pneg %p1937_p8  ;;  %s237_s10 = sshll.u32 %s1843_s9, 4  ;;  %s1952_s10 = int_to_ptr.vmem [resolvable:$true] %s237_s10 }
  0x16   : > { %s1844_s11 = smov [#allocation8]   ;;  %s1608_s15 = scalar_lea.hbm %s2337_s1, 2048 }
  0x17   : > { %p1948_p11 = pnand %p1448_p9, %p1917_p1  ;;  %s1954_s12 = sshll.u32 %s1844_s11, 4  ;;  %s224_s12 = int_to_ptr.vmem [resolvable:$true] %s1954_s12 }
  0x18   : > { %p1609_p12 = scmp.ne.s32.totalorder %s2337_s1, %s1608_s15  ;;  %p1615_p5 = scmp.lt.u32.totalorder %s1608_s15, %s2337_s1 }
  0x19   : > { %p1964_p13 = pneg %p1948_p11 }
  0x1b   : > { %p1611_p0 = pnand %p1964_p13, %p1609_p12 }
  0x1d   : > { %p1612_p3 = pneg %p1611_p0 }
  0x1f   : > { %p1617_p7 = pnand %p1615_p5, %p1612_p3 }
  0x21   : > { %1620 = shalt.err (!%p1617_p7)
}
  0x22   : > { %s1621_s9 = scalar_lea.vmem %s1941_s7, 2048  ;;  %p1629_p1 = scmp.lt.s32.totalorder %s1941_s7, %s1941_s7 }
  0x23   : > { %p1622_p9 = scmp.ne.s32.totalorder %s1941_s7, %s1621_s9  ;;  %p1630_p4 = scmp.lt.s32.totalorder %s1621_s9, %s1621_s9 }
  0x25   : > { %p1624_p10 = pnand %p1622_p9, %p1964_p13  ;;  %p1631_p12 = por %p1630_p4, %p1629_p1 }
  0x27   : > { %p1625_p6 = pneg %p1624_p10 }
  0x29   : > { %p1632_p0 = pnand %p1631_p12, %p1625_p6 }
  0x2b   : > { %1635 = shalt.err (!%p1632_p0)
}
  0x2c   : > { %s1845_s11 = smov 128   ;;  %s1846_s13 = smov 8  }
  0x2d   : > { %1451 = dma.hbm_to_vmem [thread:$0]  (!%p1948_p11), %s2337_s1, 2048, %s1941_s7, [#allocation7], %s1845_s11, %s1845_s11, %s1846_s13  }
  0x2e   : > { %s1636_s25 = scalar_lea.hbm %s2339_s3, 4096 }
  0x2f   : > { %p1637_p1 = scmp.ne.s32.totalorder %s2339_s3, %s1636_s25  ;;  %p1643_p10 = scmp.lt.u32.totalorder %s1636_s25, %s2339_s3 }
  0x31   : > { %p1639_p4 = pnand %p1637_p1, %p1964_p13 }
  0x33   : > { %p1640_p6 = pneg %p1639_p4 }
  0x35   : > { %p1645_p3 = pnand %p1643_p10, %p1640_p6 }
  0x37   : > { %1648 = shalt.err (!%p1645_p3)
}
  0x38   : > { %s1649_s7 = scalar_lea.vmem %s1952_s10, 4096  ;;  %p1657_p12 = scmp.lt.s32.totalorder %s1952_s10, %s1952_s10 }
  0x39   : > { %p1650_p5 = scmp.ne.s32.totalorder %s1952_s10, %s1649_s7  ;;  %p1658_p0 = scmp.lt.s32.totalorder %s1649_s7, %s1649_s7 }
  0x3b   : > { %p1652_p7 = pnand %p1650_p5, %p1964_p13  ;;  %p1659_p1 = por %p1658_p0, %p1657_p12 }
  0x3d   : > { %p1653_p9 = pneg %p1652_p7 }
  0x3f   : > { %p1660_p4 = pnand %p1659_p1, %p1653_p9 }
  0x41   : > { %1663 = shalt.err (!%p1660_p4)
}
  0x42   : > { %1457 = dma.hbm_to_vmem [thread:$0]  (!%p1948_p11), %s2339_s3, 4096, %s1952_s10, [#allocation10], %s1845_s11, %s1845_s11, %s1846_s13  }
  0x43   : > { %s1664_s16 = scalar_lea.hbm %s2338_s2, 32 }
  0x44   : > { %p1665_p6 = scmp.ne.s32.totalorder %s2338_s2, %s1664_s16  ;;  %p1671_p5 = scmp.lt.u32.totalorder %s1664_s16, %s2338_s2 }
  0x46   : > { %p1667_p10 = pnand %p1665_p6, %p1964_p13 }
  0x48   : > { %p1668_p3 = pneg %p1667_p10 }
  0x4a   : > { %p1673_p7 = pnand %p1671_p5, %p1668_p3 }
  0x4c   : > { %1676 = shalt.err (!%p1673_p7)
}
  0x4d   : > { %s1677_s7 = scalar_lea.vmem %s224_s12, 32  ;;  %p1685_p1 = scmp.lt.s32.totalorder %s224_s12, %s224_s12 }
  0x4e   : > { %p1678_p9 = scmp.ne.s32.totalorder %s224_s12, %s1677_s7  ;;  %p1686_p4 = scmp.lt.s32.totalorder %s1677_s7, %s1677_s7 }
  0x50   : > { %p1680_p12 = pnand %p1678_p9, %p1964_p13  ;;  %p1687_p8 = por %p1686_p4, %p1685_p1 }
  0x52   : > { %p1681_p0 = pneg %p1680_p12 }
  0x54   : > { %p1688_p2 = pnand %p1687_p8, %p1681_p0 }
  0x56   : > { %1691 = shalt.err (!%p1688_p2)
}
  0x57   : > { %1454 = dma.hbm_to_vmem [thread:$0]  (!%p1948_p11), %s2338_s2, 32, %s224_s12, [#allocation7]  }
  0x58   : > { %s1847_s29 = smov [#allocation11]   ;;  %s1692_s17 = scalar_lea.hbm %s2340_s4, 32 }
  0x59   : > { %s251_s14 = sshll.u32 %s1847_s29, 4  ;;  %p1693_p6 = scmp.ne.s32.totalorder %s2340_s4, %s1692_s17  ;;  %s252_s14 = int_to_ptr.vmem [resolvable:$true] %s251_s14 }
  0x5a   : > { %p1699_p10 = scmp.lt.u32.totalorder %s1692_s17, %s2340_s4 }
  0x5b   : > { %p1695_p2 = pnand %p1693_p6, %p1964_p13 }
  0x5d   : > { %p1696_p8 = pneg %p1695_p2 }
  0x5f   : > { %p1701_p3 = pnand %p1699_p10, %p1696_p8 }
  0x61   : > { %1704 = shalt.err (!%p1701_p3)
}
  0x62   : > { %s1705_s12 = scalar_lea.vmem %s252_s14, 32  ;;  %p1713_p12 = scmp.lt.s32.totalorder %s252_s14, %s252_s14 }
  0x63   : > { %p1706_p5 = scmp.ne.s32.totalorder %s252_s14, %s1705_s12  ;;  %p1714_p0 = scmp.lt.s32.totalorder %s1705_s12, %s1705_s12 }
  0x65   : > { %p1708_p7 = pnand %p1706_p5, %p1964_p13  ;;  %p1715_p1 = por %p1714_p0, %p1713_p12 }
  0x67   : > { %p1709_p9 = pneg %p1708_p7 }
  0x69   : > { %p1716_p4 = pnand %p1715_p1, %p1709_p9 }
  0x6b   : > { %1719 = shalt.err (!%p1716_p4)
}
  0x6c   : > { %1460 = dma.hbm_to_vmem [thread:$0]  (!%p1948_p11), %s2340_s4, 32, %s252_s14, [#allocation10]  }
  0x6d   : > { %s35_s24 = sadd.s32 1, %s1836_s22  ;;  %s42_s29 = sadd.s32 1, %s1828_s20 }
  0x6e   : > { %p37_p13 = scmp.ge.s32.totalorder %s35_s24, 2  ;;  %p49_p6 = scmp.ne.s32.totalorder %s1828_s20, %s1824_s19 }
  0x6f   : > { %p50_p2 = scmp.eq.s32.totalorder %s1840_s23, 0  ;;  %p1473_p8 = scmp.lt.s32.totalorder %s1840_s23, 2 }
  0x70   : > { %s2373_s24 = smov (%p37_p13, %s35_s24), 0  ;;  %p2357_p3 = scmp.ne.s32.totalorder %s2350_s27, 0 }
  0x71   : > { %p51_p10 = por %p50_p2, %p49_p6  ;;  %s39_s15 = ssub.s32 %s1836_s22, %s2373_s24 }
  0x72   : > { %p2061_p5 = por %p2357_p3, %p49_p6  ;;  %s262_s16 = sand.u32 1, %s1828_s20  }
  0x73   : > { %p40_p7 = scmp.eq.s32.totalorder %s39_s15, 0  ;;  %s1329_s14 = sshll.u32 %s262_s16, 7 }
  0x74   : > { %s1393_s17 = sshll.u32 %s1836_s22, 11  ;;  %s266_s27 = scalar_lea.vmem [#allocation3], %s1329_s14 }
  0x75   : > { %s2070_s25 = scalar_select %p40_p7, %s1828_s20, %s42_s29  }
  0x76   : > { %s2075_s7 = scalar_lea.hbm %s2336_s0, %s1393_s17  ;;  %s273_s12 = sshll.u32 %s266_s27, 4  ;;  %s2083_s12 = int_to_ptr.vmem [resolvable:$true] %s273_s12 }
  0x77   : > { %p2079_p11 = pnand %p1473_p8, %p51_p10  ;;  %s2085_s18 = scalar_lea.sflag [#allocation4], %s262_s16 }
  0x78   : > { %s1720_s29 = scalar_lea.hbm %s2075_s7, 2048  ;;  %s1725_s17 = scalar_lea.hbm %s2336_s0, 4096 }
  0x79   : > { %p1721_p9 = scmp.ne.s32.totalorder %s2075_s7, %s1720_s29  ;;  %p1722_p12 = pneg %p2079_p11 }
  0x7a   : > { %p1726_p4 = scmp.lt.u32.totalorder %s2075_s7, %s2336_s0  ;;  %p1727_p13 = scmp.lt.u32.totalorder %s1725_s17, %s1720_s29 }
  0x7b   : > { %p1723_p0 = pnand %p1722_p12, %p1721_p9  ;;  %p1729_p2 = scmp.lt.u32.totalorder %s1720_s29, %s2075_s7 }
  0x7c   : > { %p1728_p6 = por %p1727_p13, %p1726_p4 }
  0x7d   : > { %p1724_p1 = pneg %p1723_p0 }
  0x7e   : > { %p1730_p8 = por %p1729_p2, %p1728_p6 }
  0x80   : > { %p1731_p10 = pnand %p1730_p8, %p1724_p1 }
  0x82   : > { %1734 = shalt.err (!%p1731_p10)
}
  0x83   : > { %s1735_s16 = scalar_lea.vmem %s2083_s12, 2048  ;;  %s1848_s27 = smov [#allocation3]  }
  0x84   : > { %p1736_p3 = scmp.ne.s32.totalorder %s2083_s12, %s1735_s16  ;;  %s1740_s15 = sshll.u32 %s1848_s27, 4  ;;  %s1741_s15 = int_to_ptr.vmem [resolvable:$false] %s1740_s15 }
  0x85   : > { %s1742_s14 = scalar_lea.vmem %s1741_s15, 4096  ;;  %p1743_p0 = scmp.lt.s32.totalorder %s2083_s12, %s1741_s15 }
  0x86   : > { %p1738_p7 = pnand %p1736_p3, %p1722_p12  ;;  %p1744_p4 = scmp.lt.s32.totalorder %s1742_s14, %s1735_s16 }
  0x88   : > { %p1739_p9 = pneg %p1738_p7  ;;  %p1745_p13 = por %p1744_p4, %p1743_p0 }
  0x8a   : > { %p1746_p6 = pnand %p1745_p13, %p1739_p9 }
  0x8c   : > { %1749 = shalt.err (!%p1746_p6)
}
  0x8d   : > { %1464 = dma.hbm_to_vmem [thread:$0]  (!%p2079_p11), %s2075_s7, 2048, %s2083_s12, %s2085_s18, %s1845_s11, %s1845_s11, %s1846_s13  }
  0x8e   : > { %p2360_p12 = scmp.ne.s32.totalorder %s2354_s30, 0 }
  0x8f   : > { %s2119_s29 = sand.u32 (!%p2360_p12), 1, %s1824_s19   ;;  %p2361_p1 = scmp.ne.s32.totalorder (!%p2360_p12), %s2351_s28, 0 }
  0x90   : > { %285 = sbr.rel (%p2360_p12) target bundleno = 700 (0x2bc), region = 40  ;;  %s1333_s17 = sshll.u32 (!%p2360_p12), %s2119_s29, 7 }
  0x91   : > { %s288_s6 = scalar_lea.sflag (!%p2360_p12), [#allocation4], %s2119_s29  ;;  %s2123_s9 = scalar_lea.vmem (!%p2360_p12), [#allocation3], %s1333_s17 }
  0x97   : > { %1803 = dma.done.wait (%p2361_p1), %s288_s6, 2048  }
  0x98   : > { %1805 = vsyncadd (%p2361_p1), %s288_s6, 4294965248  ;;  %p2362_p11 = scmp.ne.s32.totalorder %s2349_s26, 0 }
  0x9a   : > { %1807 = dma.done.wait (%p2362_p11), [#allocation7], 2080  }
  0x9b   : > { %1809 = vsyncadd (%p2362_p11), [#allocation7], 4294965216 }
  0x9c   : > { %1811 = dma.done.wait (%p2362_p11), [#allocation10], 4128  }
  0x9d   : > { %1813 = vsyncadd (%p2362_p11), [#allocation10], 4294963168  ;;  %v1849_v0 = vmov 0   ;;  %v1536_v1 = vld [vmem:[#allocation6 + $0x4] ss:$8 sps:$4 sm:$0xff]   ;;  %v378_v29 = vld [vmem:[%s2123_s9 + $0x10] sm:$0xff] }
  0x9e   : > { %540 = vmatprep.mubr.bf16.mxu0 %v1849_v0  ;;  %v1538_v2 = vld [vmem:[#allocation6] ss:$8 sps:$4 sm:$0xff]   ;;  %508 = vmatprep.subr.bf16.mxu0 %v1536_v1  ;;  %v1539_v3 = vld [vmem:[#allocation6 + $0x14] ss:$8 sps:$4 sm:$0xff]   ;;  %v1541_v4 = vld [vmem:[#allocation6 + $0x10] ss:$8 sps:$4 sm:$0xff]  }
  0x9f   : > { %509 = vmatpush1.bf16.msra.mxu0 %v1538_v2  ;;  %v1542_v5 = vld [vmem:[#allocation6 + $0x24] ss:$8 sps:$4 sm:$0xff]   ;;  %v1544_v6 = vld [vmem:[#allocation6 + $0x20] ss:$8 sps:$4 sm:$0xff]   ;;  %v1545_v7 = vld [vmem:[#allocation6 + $0x34] ss:$8 sps:$4 sm:$0xff]  }
  0xa0   : > { %510 = vmatprep.subr.bf16.mxu0 %v1539_v3  ;;  %v1547_v8 = vld [vmem:[#allocation6 + $0x30] ss:$8 sps:$4 sm:$0xff]   ;;  %v1548_v9 = vld [vmem:[#allocation6 + $0x44] ss:$8 sps:$4 sm:$0xff]   ;;  %v1550_v10 = vld [vmem:[#allocation6 + $0x40] ss:$8 sps:$4 sm:$0xff]  }
  0xa1   : > { %v1551_v11 = vld [vmem:[#allocation6 + $0x54] ss:$8 sps:$4 sm:$0xff]   ;;  %v1562_v12 = vld [vmem:[#allocation9 + $0x4] ss:$8 sps:$4 sm:$0xff]   ;;  %v1560_v13 = vld [vmem:[#allocation9] ss:$8 sps:$4 sm:$0xff]  }
  0xa2   : > { %v1553_v14 = vld [vmem:[#allocation6 + $0x50] ss:$8 sps:$4 sm:$0xff]   ;;  %1396 = vmatprep.subr.bf16.mxu1 %v1562_v12  ;;  %v1554_v16 = vld [vmem:[#allocation6 + $0x64] ss:$8 sps:$4 sm:$0xff]   ;;  %v1556_v18 = vld [vmem:[#allocation6 + $0x60] ss:$8 sps:$4 sm:$0xff]  }
  0xa3   : > { %511 = vmatpush1.bf16.msra.mxu0 %v1541_v4  ;;  %v1565_v15 = vld [vmem:[#allocation9 + $0x14] ss:$8 sps:$4 sm:$0xff]   ;;  %1412 = vmatpush1.bf16.msra.mxu1 %v1560_v13  ;;  %v1563_v17 = vld [vmem:[#allocation9 + $0x10] ss:$8 sps:$4 sm:$0xff]   ;;  %v1568_v19 = vld [vmem:[#allocation9 + $0x24] ss:$8 sps:$4 sm:$0xff]  }
  0xa4   : > { %512 = vmatprep.subr.bf16.mxu0 %v1542_v5  ;;  %1397 = vmatprep.subr.bf16.mxu1 %v1565_v15  ;;  %v1557_v20 = vld [vmem:[#allocation6 + $0x74] ss:$8 sps:$4 sm:$0xff]   ;;  %v1559_v21 = vld [vmem:[#allocation6 + $0x70] ss:$8 sps:$4 sm:$0xff]   ;;  %v376_v22 = vld [vmem:[%s2123_s9] sm:$0xff]  ;;  %s1338_s26 = sshll.u32 %s2119_s29, 8 }
  0xa5   : > { %v1566_v23 = vld [vmem:[#allocation9 + $0x20] ss:$8 sps:$4 sm:$0xff]   ;;  %v1571_v25 = vld [vmem:[#allocation9 + $0x34] ss:$8 sps:$4 sm:$0xff]   ;;  %v1569_v27 = vld [vmem:[#allocation9 + $0x30] ss:$8 sps:$4 sm:$0xff]  }
  0xa6   : > { %v377_v24 = vld [vmem:[%s2123_s9 + $0x8] sm:$0xff]  ;;  %v379_v30 = vld [vmem:[%s2123_s9 + $0x18] sm:$0xff]  ;;  %v380_v37 = vld [vmem:[%s2123_s9 + $0x20] sm:$0xff]  ;;  %s2216_s28 = scalar_lea.vmem [#allocation12], %s1338_s26  ;;  %s1395_s30 = sshll.u32 %s1832_s21, 12 }
  0xa7   : > { %513 = vmatpush1.bf16.msra.mxu0 %v1544_v6  ;;  %1413 = vmatpush1.bf16.msra.mxu1 %v1563_v17  ;;  %v392_v26 = vpack.c.bf16 %v377_v24, %v376_v22  ;;  %v1574_v28 = vld [vmem:[#allocation9 + $0x44] ss:$8 sps:$4 sm:$0xff]   ;;  %v1572_v31 = vld [vmem:[#allocation9 + $0x40] ss:$8 sps:$4 sm:$0xff]   ;;  %v1577_v32 = vld [vmem:[#allocation9 + $0x54] ss:$8 sps:$4 sm:$0xff]   ;;  %v393_v33 = vpack.c.bf16 %v379_v30, %v378_v29  ;;  %s2281_s12 = scalar_lea.hbm %s2341_s5, %s1395_s30 }
  0xa8   : > { %514 = vmatprep.subr.bf16.mxu0 %v1545_v7  ;;  %1398 = vmatprep.subr.bf16.mxu1 %v1568_v19  ;;  %v1575_v34 = vld [vmem:[#allocation9 + $0x50] ss:$8 sps:$4 sm:$0xff]   ;;  %v1580_v35 = vld [vmem:[#allocation9 + $0x64] ss:$8 sps:$4 sm:$0xff]   ;;  %v1578_v36 = vld [vmem:[#allocation9 + $0x60] ss:$8 sps:$4 sm:$0xff]  }
  0xa9   : > { %v381_v38 = vld [vmem:[%s2123_s9 + $0x28] sm:$0xff]  ;;  %v1583_v39 = vld [vmem:[#allocation9 + $0x74] ss:$8 sps:$4 sm:$0xff]   ;;  %v1581_v41 = vld [vmem:[#allocation9 + $0x70] ss:$8 sps:$4 sm:$0xff]   ;;  %s1196_s11 = sshll.u32 %s2216_s28, 4  ;;  %s2283_s11 = int_to_ptr.vmem [resolvable:$true] %s1196_s11 }
  0xaa   : > { %v394_v40 = vpack.c.bf16 %v381_v38, %v380_v37  ;;  %v1586_v42 = vld [vmem:[#allocation9 + $0x84] ss:$8 sps:$4 sm:$0xff]   ;;  %v1584_v43 = vld [vmem:[#allocation9 + $0x80] ss:$8 sps:$4 sm:$0xff]   ;;  %v383_v45 = vld [vmem:[%s2123_s9 + $0x38] sm:$0xff]  ;;  %s1182_s21 = scalar_lea.sflag [#allocation5], %s2119_s29 }
  0xab   : > { %515 = vmatpush1.bf16.msra.mxu0 %v1547_v8  ;;  %1414 = vmatpush1.bf16.msra.mxu1 %v1566_v23  ;;  %v382_v44 = vld [vmem:[%s2123_s9 + $0x30] sm:$0xff]  ;;  %v1590_v50 = vld [vmem:[#allocation9 + $0xa0] ss:$8 sps:$4 sm:$0xff]   ;;  %v387_v59 = vld [vmem:[%s2123_s9 + $0x58] sm:$0xff]  ;;  %s1750_s10 = scalar_lea.vmem %s2283_s11, 4096  ;;  %s1850_s18 = smov [#allocation12]  }
  0xac   : > { %516 = vmatprep.subr.bf16.mxu0 %v1548_v9  ;;  %1399 = vmatprep.subr.bf16.mxu1 %v1571_v25  ;;  %v1589_v46 = vld [vmem:[#allocation9 + $0x94] ss:$8 sps:$4 sm:$0xff]   ;;  %v395_v47 = vpack.c.bf16 %v383_v45, %v382_v44  ;;  %v1587_v48 = vld [vmem:[#allocation9 + $0x90] ss:$8 sps:$4 sm:$0xff]   ;;  %v1592_v49 = vld [vmem:[#allocation9 + $0xa4] ss:$8 sps:$4 sm:$0xff]   ;;  %p1751_p2 = scmp.ne.s32.totalorder %s2283_s11, %s1750_s10 }
  0xad   : > { %v384_v51 = vld [vmem:[%s2123_s9 + $0x40] sm:$0xff]  ;;  %v385_v52 = vld [vmem:[%s2123_s9 + $0x48] sm:$0xff]  ;;  %v1593_v55 = vld [vmem:[#allocation9 + $0xb0] ss:$8 sps:$4 sm:$0xff]   ;;  %s1754_s16 = sshll.u32 %s1850_s18, 4  ;;  %s1755_s16 = int_to_ptr.vmem [resolvable:$false] %s1754_s16 }
  0xae   : > { %v1595_v53 = vld [vmem:[#allocation9 + $0xb4] ss:$8 sps:$4 sm:$0xff]   ;;  %v396_v54 = vpack.c.bf16 %v385_v52, %v384_v51  ;;  %v1598_v56 = vld [vmem:[#allocation9 + $0xc4] ss:$8 sps:$4 sm:$0xff]   ;;  %v1596_v57 = vld [vmem:[#allocation9 + $0xc0] ss:$8 sps:$4 sm:$0xff]   ;;  %p1752_p8 = pnand %p1751_p2, %p2061_p5  ;;  %p1757_p3 = scmp.lt.s32.totalorder %s2283_s11, %s1755_s16 }
  0xaf   : > { %517 = vmatpush1.bf16.msra.mxu0 %v1550_v10  ;;  %1415 = vmatpush1.bf16.msra.mxu1 %v1569_v27  ;;  %v386_v58 = vld [vmem:[%s2123_s9 + $0x50] sm:$0xff]  ;;  %v388_v63 = vld [vmem:[%s2123_s9 + $0x60] sm:$0xff]  ;;  %v389_v1 = vld [vmem:[%s2123_s9 + $0x68] sm:$0xff]  ;;  %s1756_s27 = scalar_lea.vmem %s1755_s16, 8192 }
  0xb0   : > { %518 = vmatprep.subr.bf16.mxu0 %v1551_v11  ;;  %1400 = vmatprep.subr.bf16.mxu1 %v1574_v28  ;;  %v1601_v60 = vld [vmem:[#allocation9 + $0xd4] ss:$8 sps:$4 sm:$0xff]   ;;  %v397_v61 = vpack.c.bf16 %v387_v59, %v386_v58  ;;  %v1599_v62 = vld [vmem:[#allocation9 + $0xd0] ss:$8 sps:$4 sm:$0xff]   ;;  %v398_v2 = vpack.c.bf16 %v389_v1, %v388_v63  ;;  %v1604_v6 = vld [vmem:[#allocation9 + $0xe4] ss:$8 sps:$4 sm:$0xff]   ;;  %p1753_p10 = pneg %p1752_p8  ;;  %p1758_p7 = scmp.lt.s32.totalorder %s1756_s27, %s1750_s10 }
  0xb1   : > { %v390_v3 = vld [vmem:[%s2123_s9 + $0x70] sm:$0xff]  ;;  %v391_v4 = vld [vmem:[%s2123_s9 + $0x78] sm:$0xff]  ;;  %v1602_v7 = vld [vmem:[#allocation9 + $0xe0] ss:$8 sps:$4 sm:$0xff]  }
  0xb2   : > { %v399_v5 = vpack.c.bf16 %v391_v4, %v390_v3  ;;  %v1607_v8 = vld [vmem:[#allocation9 + $0xf4] ss:$8 sps:$4 sm:$0xff]   ;;  %v1605_v9 = vld [vmem:[#allocation9 + $0xf0] ss:$8 sps:$4 sm:$0xff]   ;;  %p1759_p9 = por %p1758_p7, %p1757_p3 }
  0xb3   : > { %519 = vmatpush1.bf16.msra.mxu0 %v1553_v14  ;;  %1416 = vmatpush1.bf16.msra.mxu1 %v1572_v31 }
  0xb4   : > { %520 = vmatprep.subr.bf16.mxu0 %v1554_v16  ;;  %1401 = vmatprep.subr.bf16.mxu1 %v1577_v32  ;;  %p1760_p0 = pnand %p1759_p9, %p1753_p10 }
  0xb7   : > { %521 = vmatpush1.bf16.msra.mxu0 %v1556_v18  ;;  %1417 = vmatpush1.bf16.msra.mxu1 %v1575_v34 }
  0xb8   : > { %522 = vmatprep.subr.bf16.mxu0 %v1557_v20  ;;  %1402 = vmatprep.subr.bf16.mxu1 %v1580_v35 }
  0xbb   : > { %523 = vmatpush1.bf16.msra.mxu0 %v1559_v21  ;;  %1418 = vmatpush1.bf16.msra.mxu1 %v1578_v36 }
  0xbc   : > { %893 = vmatprep.subr.bf16.mxu0 %v1562_v12  ;;  %1403 = vmatprep.subr.bf16.mxu1 %v1583_v39  ;;  %v416_v12 = vld [vmem:[#allocation8] sm:$0x3] }
  0xbe   : > { %541 = vmatmul.mubr.bf16.vlgmr.msra.gmra.mrb[0].mxu0 %v392_v26 }
  0xbf   : > { %550 = vmatprep.mubr.bf16.mxu0 %v1849_v0  ;;  %894 = vmatpush1.bf16.msra.mxu0 %v1560_v13 }
  0xc0   : > { %895 = vmatprep.subr.bf16.mxu0 %v1565_v15  ;;  %1419 = vmatpush1.bf16.msra.mxu1 %v1581_v41 }
  0xc1   : > { %1404 = vmatprep.subr.bf16.mxu1 %v1586_v42 }
  0xc3   : > { %896 = vmatpush1.bf16.msra.mxu0 %v1563_v17 }
  0xc4   : > { %897 = vmatprep.subr.bf16.mxu0 %v1568_v19  ;;  %1420 = vmatpush1.bf16.msra.mxu1 %v1584_v43 }
  0xc5   : > { %1405 = vmatprep.subr.bf16.mxu1 %v1589_v46 }
  0xc6   : > { %551 = vmatmul.mubr.bf16.gmra.mrb[4].mxu0 %v393_v33 }
  0xc7   : > { %560 = vmatprep.mubr.bf16.mxu0 %v1849_v0  ;;  %898 = vmatpush1.bf16.msra.mxu0 %v1566_v23 }
  0xc8   : > { %899 = vmatprep.subr.bf16.mxu0 %v1571_v25  ;;  %1421 = vmatpush1.bf16.msra.mxu1 %v1587_v48 }
  0xc9   : > { %1406 = vmatprep.subr.bf16.mxu1 %v1592_v49 }
  0xcb   : > { %900 = vmatpush1.bf16.msra.mxu0 %v1569_v27 }
  0xcc   : > { %901 = vmatprep.subr.bf16.mxu0 %v1574_v28  ;;  %1422 = vmatpush1.bf16.msra.mxu1 %v1590_v50 }
  0xcd   : > { %1407 = vmatprep.subr.bf16.mxu1 %v1595_v53 }
  0xce   : > { %561 = vmatmul.mubr.bf16.gmra.mrb[8].mxu0 %v394_v40 }
  0xcf   : > { %570 = vmatprep.mubr.bf16.mxu0 %v1849_v0  ;;  %902 = vmatpush1.bf16.msra.mxu0 %v1572_v31 }
  0xd0   : > { %903 = vmatprep.subr.bf16.mxu0 %v1577_v32  ;;  %1423 = vmatpush1.bf16.msra.mxu1 %v1593_v55 }
  0xd1   : > { %1408 = vmatprep.subr.bf16.mxu1 %v1598_v56 }
  0xd3   : > { %904 = vmatpush1.bf16.msra.mxu0 %v1575_v34 }
  0xd4   : > { %905 = vmatprep.subr.bf16.mxu0 %v1580_v35  ;;  %1424 = vmatpush1.bf16.msra.mxu1 %v1596_v57 }
  0xd5   : > { %1409 = vmatprep.subr.bf16.mxu1 %v1601_v60 }
  0xd6   : > { %571 = vmatmul.mubr.bf16.gmra.mrb[12].mxu0 %v395_v47 }
  0xd7   : > { %580 = vmatprep.mubr.bf16.mxu0 %v1849_v0  ;;  %906 = vmatpush1.bf16.msra.mxu0 %v1578_v36 }
  0xd8   : > { %907 = vmatprep.subr.bf16.mxu0 %v1583_v39  ;;  %1425 = vmatpush1.bf16.msra.mxu1 %v1599_v62 }
  0xd9   : > { %1410 = vmatprep.subr.bf16.mxu1 %v1604_v6 }
  0xdb   : > { %908 = vmatpush1.bf16.msra.mxu0 %v1581_v41 }
  0xdc   : > { %909 = vmatprep.subr.bf16.mxu0 %v1586_v42  ;;  %1426 = vmatpush1.bf16.msra.mxu1 %v1602_v7 }
  0xdd   : > { %1411 = vmatprep.subr.bf16.mxu1 %v1607_v8 }
  0xde   : > { %581 = vmatmul.mubr.bf16.gmra.mrb[16].mxu0 %v396_v54 }
  0xdf   : > { %590 = vmatprep.mubr.bf16.mxu0 %v1849_v0  ;;  %910 = vmatpush1.bf16.msra.mxu0 %v1584_v43 }
  0xe0   : > { %911 = vmatprep.subr.bf16.mxu0 %v1589_v46  ;;  %1427 = vmatpush1.bf16.msra.mxu1 %v1605_v9 }
  0xe3   : > { %912 = vmatpush1.bf16.msra.mxu0 %v1587_v48 }
  0xe4   : > { %913 = vmatprep.subr.bf16.mxu0 %v1592_v49 }
  0xe6   : > { %591 = vmatmul.mubr.bf16.gmra.mrb[20].mxu0 %v397_v61 }
  0xe7   : > { %600 = vmatprep.mubr.bf16.mxu0 %v1849_v0  ;;  %914 = vmatpush1.bf16.msra.mxu0 %v1590_v50 }
  0xe8   : > { %915 = vmatprep.subr.bf16.mxu0 %v1595_v53 }
  0xeb   : > { %916 = vmatpush1.bf16.msra.mxu0 %v1593_v55 }
  0xec   : > { %917 = vmatprep.subr.bf16.mxu0 %v1598_v56 }
  0xee   : > { %601 = vmatmul.mubr.bf16.gmra.mrb[24].mxu0 %v398_v2 }
  0xef   : > { %610 = vmatprep.mubr.bf16.mxu0 %v1849_v0  ;;  %918 = vmatpush1.bf16.msra.mxu0 %v1596_v57  ;;  %v418_v0 = vlaneseq }
  0xf0   : > { %919 = vmatprep.subr.bf16.mxu0 %v1601_v60 }
  0xf1   : > { %v2161_v10 = vshrl.u32 %v418_v0, 7 }
  0xf3   : > { %920 = vmatpush1.bf16.msra.mxu0 %v1599_v62  ;;  %v420_v11 = vsub.s32 0, %v2161_v10  ;;  %v424_v13 = vsub.s32 1, %v2161_v10 }
  0xf4   : > { %921 = vmatprep.subr.bf16.mxu0 %v1604_v6 }
  0xf5   : > { %v2167_v14 = vrot.slane %v416_v12, %v420_v11  ;;  %v2171_v15 = vrot.slane %v416_v12, %v424_v13 }
  0xf6   : > { %611 = vmatmul.mubr.bf16.gmra.mrb[28].mxu0 %v399_v5 }
  0xf7   : > { %922 = vmatpush1.bf16.msra.mxu0 %v1602_v7 }
  0xf8   : > { %923 = vmatprep.subr.bf16.mxu0 %v1607_v8 }
  0xfb   : > { %924 = vmatpush1.bf16.msra.mxu0 %v1605_v9 }
 0x191   : > { %v542_v16 = vpop.f32.mrb[0].mxu0 }
 0x192   : > { %v543_v17 = vadd.f32 %v542_v16, %v2167_v14  ;;  %v544_v18 = vpop.f32.mrb[1].mxu0 }
 0x193   : > { %v545_v19 = vadd.f32 %v544_v18, %v2171_v15  ;;  %v546_v20 = vpop.f32.mrb[2].mxu0 }
 0x194   : > { %v547_v21 = vadd.f32 %v546_v20, %v2167_v14  ;;  %v548_v22 = vpop.f32.mrb[3].mxu0  ;;  %v621_v24 = vmax.f32 %v543_v17, 0.0 }
 0x195   : > { %v549_v23 = vadd.f32 %v548_v22, %v2171_v15  ;;  %v622_v26 = vmax.f32 %v545_v19, 0.0 }
 0x196   : > { %v623_v25 = vmax.f32 %v547_v21, 0.0 }
 0x197   : > { %v624_v27 = vmax.f32 %v549_v23, 0.0 }
 0x198   : > { %v685_v28 = vpack.c.bf16 %v623_v25, %v621_v24 }
 0x199   : > { %v686_v29 = vpack.c.bf16 %v624_v27, %v622_v26  ;;  %v552_v30 = vpop.f32.mrb[4].mxu0 }
 0x19a   : > { %v553_v31 = vadd.f32 %v552_v30, %v2167_v14  ;;  %v554_v32 = vpop.f32.mrb[5].mxu0 }
 0x19b   : > { %v555_v33 = vadd.f32 %v554_v32, %v2171_v15  ;;  %v556_v34 = vpop.f32.mrb[6].mxu0  ;;  %925 = vmatprep.mubr.bf16.mxu0 %v686_v29 }
 0x19c   : > { %v557_v35 = vadd.f32 %v556_v34, %v2167_v14  ;;  %v558_v36 = vpop.f32.mrb[7].mxu0  ;;  %926 = vmatmul.mubr.bf16.vlgmr.msra.gmra.mrb[32].mxu0 %v685_v28  ;;  %v625_v38 = vmax.f32 %v553_v31, 0.0 }
 0x19d   : > { %v559_v37 = vadd.f32 %v558_v36, %v2171_v15  ;;  %v626_v40 = vmax.f32 %v555_v33, 0.0 }
 0x19e   : > { %v627_v39 = vmax.f32 %v557_v35, 0.0 }
 0x19f   : > { %v628_v41 = vmax.f32 %v559_v37, 0.0 }
 0x1a0   : > { %v687_v42 = vpack.c.bf16 %v627_v39, %v625_v38 }
 0x1a1   : > { %v688_v43 = vpack.c.bf16 %v628_v41, %v626_v40  ;;  %v562_v44 = vpop.f32.mrb[8].mxu0 }
 0x1a2   : > { %v563_v45 = vadd.f32 %v562_v44, %v2167_v14  ;;  %v564_v46 = vpop.f32.mrb[9].mxu0 }
 0x1a3   : > { %v565_v47 = vadd.f32 %v564_v46, %v2171_v15  ;;  %v566_v48 = vpop.f32.mrb[10].mxu0  ;;  %935 = vmatprep.mubr.bf16.mxu0 %v688_v43 }
 0x1a4   : > { %v567_v49 = vadd.f32 %v566_v48, %v2167_v14  ;;  %v568_v50 = vpop.f32.mrb[11].mxu0  ;;  %936 = vmatmul.mubr.bf16.gmra.mrb[36].mxu0 %v687_v42  ;;  %v629_v52 = vmax.f32 %v563_v45, 0.0 }
 0x1a5   : > { %v569_v51 = vadd.f32 %v568_v50, %v2171_v15  ;;  %v630_v54 = vmax.f32 %v565_v47, 0.0 }
 0x1a6   : > { %v631_v53 = vmax.f32 %v567_v49, 0.0 }
 0x1a7   : > { %v632_v55 = vmax.f32 %v569_v51, 0.0 }
 0x1a8   : > { %v689_v56 = vpack.c.bf16 %v631_v53, %v629_v52 }
 0x1a9   : > { %v572_v57 = vpop.f32.mrb[12].mxu0  ;;  %v690_v58 = vpack.c.bf16 %v632_v55, %v630_v54 }
 0x1aa   : > { %v573_v59 = vadd.f32 %v572_v57, %v2167_v14  ;;  %v574_v60 = vpop.f32.mrb[13].mxu0 }
 0x1ab   : > { %v575_v61 = vadd.f32 %v574_v60, %v2171_v15  ;;  %v576_v62 = vpop.f32.mrb[14].mxu0  ;;  %945 = vmatprep.mubr.bf16.mxu1 %v690_v58 }
 0x1ac   : > { %v577_v63 = vadd.f32 %v576_v62, %v2167_v14  ;;  %v578_v1 = vpop.f32.mrb[15].mxu0  ;;  %946 = vmatmul.mubr.bf16.vlgmr.msra.gmra.mrb[0].mxu1 %v689_v56  ;;  %v633_v3 = vmax.f32 %v573_v59, 0.0 }
 0x1ad   : > { %v579_v2 = vadd.f32 %v578_v1, %v2171_v15  ;;  %v634_v5 = vmax.f32 %v575_v61, 0.0 }
 0x1ae   : > { %v635_v4 = vmax.f32 %v577_v63, 0.0 }
 0x1af   : > { %v636_v6 = vmax.f32 %v579_v2, 0.0 }
 0x1b0   : > { %v691_v7 = vpack.c.bf16 %v635_v4, %v633_v3 }
 0x1b1   : > { %v692_v8 = vpack.c.bf16 %v636_v6, %v634_v5  ;;  %v582_v9 = vpop.f32.mrb[16].mxu0  ;;  %v1105_v6 = vld [vmem:[#allocation11] sm:$0x3] }
 0x1b2   : > { %v583_v0 = vadd.f32 %v582_v9, %v2167_v14  ;;  %v584_v12 = vpop.f32.mrb[17].mxu0 }
 0x1b3   : > { %v585_v16 = vadd.f32 %v584_v12, %v2171_v15  ;;  %v586_v17 = vpop.f32.mrb[18].mxu0  ;;  %955 = vmatprep.mubr.bf16.mxu1 %v692_v8 }
 0x1b4   : > { %v587_v18 = vadd.f32 %v586_v17, %v2167_v14  ;;  %v588_v19 = vpop.f32.mrb[19].mxu0  ;;  %956 = vmatmul.mubr.bf16.gmra.mrb[4].mxu1 %v691_v7  ;;  %v637_v21 = vmax.f32 %v583_v0, 0.0  ;;  %v2208_v7 = vrot.slane %v1105_v6, %v420_v11 }
 0x1b5   : > { %v589_v20 = vadd.f32 %v588_v19, %v2171_v15  ;;  %v638_v23 = vmax.f32 %v585_v16, 0.0 }
 0x1b6   : > { %v639_v22 = vmax.f32 %v587_v18, 0.0 }
 0x1b7   : > { %v640_v24 = vmax.f32 %v589_v20, 0.0 }
 0x1b8   : > { %v693_v25 = vpack.c.bf16 %v639_v22, %v637_v21 }
 0x1b9   : > { %v694_v26 = vpack.c.bf16 %v640_v24, %v638_v23  ;;  %v592_v27 = vpop.f32.mrb[20].mxu0 }
 0x1ba   : > { %v593_v28 = vadd.f32 %v592_v27, %v2167_v14  ;;  %v594_v29 = vpop.f32.mrb[21].mxu0 }
 0x1bb   : > { %v595_v30 = vadd.f32 %v594_v29, %v2171_v15  ;;  %v596_v31 = vpop.f32.mrb[22].mxu0  ;;  %965 = vmatprep.mubr.bf16.mxu1 %v694_v26 }
 0x1bc   : > { %v597_v32 = vadd.f32 %v596_v31, %v2167_v14  ;;  %v598_v33 = vpop.f32.mrb[23].mxu0  ;;  %966 = vmatmul.mubr.bf16.gmra.mrb[8].mxu1 %v693_v25  ;;  %v641_v35 = vmax.f32 %v593_v28, 0.0 }
 0x1bd   : > { %v599_v34 = vadd.f32 %v598_v33, %v2171_v15  ;;  %v642_v37 = vmax.f32 %v595_v30, 0.0 }
 0x1be   : > { %v643_v36 = vmax.f32 %v597_v32, 0.0 }
 0x1bf   : > { %v644_v38 = vmax.f32 %v599_v34, 0.0 }
 0x1c0   : > { %v695_v39 = vpack.c.bf16 %v643_v36, %v641_v35 }
 0x1c1   : > { %v696_v40 = vpack.c.bf16 %v644_v38, %v642_v37  ;;  %v602_v41 = vpop.f32.mrb[24].mxu0 }
 0x1c2   : > { %v603_v42 = vadd.f32 %v602_v41, %v2167_v14  ;;  %v604_v43 = vpop.f32.mrb[25].mxu0 }
 0x1c3   : > { %v605_v44 = vadd.f32 %v604_v43, %v2171_v15  ;;  %v606_v45 = vpop.f32.mrb[26].mxu0  ;;  %975 = vmatprep.mubr.bf16.mxu1 %v696_v40 }
 0x1c4   : > { %v607_v46 = vadd.f32 %v606_v45, %v2167_v14  ;;  %v608_v47 = vpop.f32.mrb[27].mxu0  ;;  %976 = vmatmul.mubr.bf16.gmra.mrb[12].mxu1 %v695_v39  ;;  %v645_v49 = vmax.f32 %v603_v42, 0.0 }
 0x1c5   : > { %v609_v48 = vadd.f32 %v608_v47, %v2171_v15  ;;  %v646_v51 = vmax.f32 %v605_v44, 0.0 }
 0x1c6   : > { %v647_v50 = vmax.f32 %v607_v46, 0.0 }
 0x1c7   : > { %v648_v52 = vmax.f32 %v609_v48, 0.0 }
 0x1c8   : > { %v697_v53 = vpack.c.bf16 %v647_v50, %v645_v49 }
 0x1c9   : > { %v698_v54 = vpack.c.bf16 %v648_v52, %v646_v51  ;;  %v612_v55 = vpop.f32.mrb[28].mxu0 }
 0x1ca   : > { %v613_v56 = vadd.f32 %v612_v55, %v2167_v14  ;;  %v614_v57 = vpop.f32.mrb[29].mxu0 }
 0x1cb   : > { %v615_v58 = vadd.f32 %v614_v57, %v2171_v15  ;;  %v616_v59 = vpop.f32.mrb[30].mxu0  ;;  %985 = vmatprep.mubr.bf16.mxu1 %v698_v54 }
 0x1cc   : > { %v617_v60 = vadd.f32 %v616_v59, %v2167_v14  ;;  %v618_v61 = vpop.f32.mrb[31].mxu0  ;;  %986 = vmatmul.mubr.bf16.gmra.mrb[16].mxu1 %v697_v53  ;;  %v649_v63 = vmax.f32 %v613_v56, 0.0  ;;  %v2212_v14 = vrot.slane %v1105_v6, %v424_v13 }
 0x1cd   : > { %v619_v62 = vadd.f32 %v618_v61, %v2171_v15  ;;  %v650_v2 = vmax.f32 %v615_v58, 0.0 }
 0x1ce   : > { %v651_v1 = vmax.f32 %v617_v60, 0.0 }
 0x1cf   : > { %v652_v3 = vmax.f32 %v619_v62, 0.0 }
 0x1d0   : > { %v699_v4 = vpack.c.bf16 %v651_v1, %v649_v63 }
 0x1d1   : > { %v700_v5 = vpack.c.bf16 %v652_v3, %v650_v2 }
 0x1d3   : > { %995 = vmatprep.mubr.bf16.mxu1 %v700_v5 }
 0x1d4   : > { %996 = vmatmul.mubr.bf16.gmra.mrb[20].mxu1 %v699_v4 }
 0x26f   : > { %v927_v8 = vpop.f32.mrb[32].mxu0 }
 0x270   : > { %v1117_v15 = vadd.f32 %v2208_v7, %v927_v8  ;;  %v929_v9 = vpop.f32.mrb[33].mxu0 }
 0x271   : > { %v1118_v0 = vadd.f32 %v2212_v14, %v929_v9  ;;  %v931_v12 = vpop.f32.mrb[34].mxu0 }
 0x272   : > { %1149 = vst [vmem:[%s2216_s28] sm:$0xff] %v1117_v15  ;;  %v1119_v10 = vadd.f32 %v2208_v7, %v931_v12  ;;  %v933_v11 = vpop.f32.mrb[35].mxu0 }
 0x273   : > { %1150 = vst [vmem:[%s2216_s28 + $0x8] sm:$0xff] %v1118_v0  ;;  %v1120_v13 = vadd.f32 %v2212_v14, %v933_v11 }
 0x274   : > { %1151 = vst [vmem:[%s2216_s28 + $0x10] sm:$0xff] %v1119_v10 }
 0x275   : > { %1152 = vst [vmem:[%s2216_s28 + $0x18] sm:$0xff] %v1120_v13 }
 0x277   : > { %v937_v16 = vpop.f32.mrb[36].mxu0 }
 0x278   : > { %v1121_v17 = vadd.f32 %v2208_v7, %v937_v16  ;;  %v939_v18 = vpop.f32.mrb[37].mxu0 }
 0x279   : > { %v1122_v19 = vadd.f32 %v2212_v14, %v939_v18  ;;  %v941_v20 = vpop.f32.mrb[38].mxu0 }
 0x27a   : > { %1153 = vst [vmem:[%s2216_s28 + $0x20] sm:$0xff] %v1121_v17  ;;  %v1123_v21 = vadd.f32 %v2208_v7, %v941_v20  ;;  %v943_v22 = vpop.f32.mrb[39].mxu0 }
 0x27b   : > { %1154 = vst [vmem:[%s2216_s28 + $0x28] sm:$0xff] %v1122_v19  ;;  %v1124_v23 = vadd.f32 %v2212_v14, %v943_v22 }
 0x27c   : > { %1155 = vst [vmem:[%s2216_s28 + $0x30] sm:$0xff] %v1123_v21 }
 0x27d   : > { %1156 = vst [vmem:[%s2216_s28 + $0x38] sm:$0xff] %v1124_v23 }
 0x27f   : > { %v947_v24 = vpop.f32.mrb[0].mxu1 }
 0x280   : > { %v1125_v25 = vadd.f32 %v2208_v7, %v947_v24  ;;  %v949_v26 = vpop.f32.mrb[1].mxu1 }
 0x281   : > { %v1126_v27 = vadd.f32 %v2212_v14, %v949_v26  ;;  %v951_v28 = vpop.f32.mrb[2].mxu1 }
 0x282   : > { %1157 = vst [vmem:[%s2216_s28 + $0x40] sm:$0xff] %v1125_v25  ;;  %v1127_v29 = vadd.f32 %v2208_v7, %v951_v28  ;;  %v953_v30 = vpop.f32.mrb[3].mxu1 }
 0x283   : > { %1158 = vst [vmem:[%s2216_s28 + $0x48] sm:$0xff] %v1126_v27  ;;  %v1128_v31 = vadd.f32 %v2212_v14, %v953_v30 }
 0x284   : > { %1159 = vst [vmem:[%s2216_s28 + $0x50] sm:$0xff] %v1127_v29 }
 0x285   : > { %1160 = vst [vmem:[%s2216_s28 + $0x58] sm:$0xff] %v1128_v31 }
 0x287   : > { %v957_v32 = vpop.f32.mrb[4].mxu1 }
 0x288   : > { %v1129_v33 = vadd.f32 %v2208_v7, %v957_v32  ;;  %v959_v34 = vpop.f32.mrb[5].mxu1 }
 0x289   : > { %v1130_v35 = vadd.f32 %v2212_v14, %v959_v34  ;;  %v961_v36 = vpop.f32.mrb[6].mxu1 }
 0x28a   : > { %1161 = vst [vmem:[%s2216_s28 + $0x60] sm:$0xff] %v1129_v33  ;;  %v1131_v37 = vadd.f32 %v2208_v7, %v961_v36  ;;  %v963_v38 = vpop.f32.mrb[7].mxu1 }
 0x28b   : > { %1162 = vst [vmem:[%s2216_s28 + $0x68] sm:$0xff] %v1130_v35  ;;  %v1132_v39 = vadd.f32 %v2212_v14, %v963_v38 }
 0x28c   : > { %1163 = vst [vmem:[%s2216_s28 + $0x70] sm:$0xff] %v1131_v37 }
 0x28d   : > { %1164 = vst [vmem:[%s2216_s28 + $0x78] sm:$0xff] %v1132_v39 }
 0x28f   : > { %v967_v40 = vpop.f32.mrb[8].mxu1 }
 0x290   : > { %v1133_v41 = vadd.f32 %v2208_v7, %v967_v40  ;;  %v969_v42 = vpop.f32.mrb[9].mxu1 }
 0x291   : > { %v1134_v43 = vadd.f32 %v2212_v14, %v969_v42  ;;  %v971_v44 = vpop.f32.mrb[10].mxu1 }
 0x292   : > { %1165 = vst [vmem:[%s2216_s28 + $0x80] sm:$0xff] %v1133_v41  ;;  %v1135_v45 = vadd.f32 %v2208_v7, %v971_v44  ;;  %v973_v46 = vpop.f32.mrb[11].mxu1 }
 0x293   : > { %1166 = vst [vmem:[%s2216_s28 + $0x88] sm:$0xff] %v1134_v43  ;;  %v1136_v47 = vadd.f32 %v2212_v14, %v973_v46 }
 0x294   : > { %1167 = vst [vmem:[%s2216_s28 + $0x90] sm:$0xff] %v1135_v45 }
 0x295   : > { %1168 = vst [vmem:[%s2216_s28 + $0x98] sm:$0xff] %v1136_v47 }
 0x297   : > { %v977_v48 = vpop.f32.mrb[12].mxu1 }
 0x298   : > { %v1137_v49 = vadd.f32 %v2208_v7, %v977_v48  ;;  %v979_v50 = vpop.f32.mrb[13].mxu1 }
 0x299   : > { %v1138_v51 = vadd.f32 %v2212_v14, %v979_v50  ;;  %v981_v52 = vpop.f32.mrb[14].mxu1 }
 0x29a   : > { %1169 = vst [vmem:[%s2216_s28 + $0xa0] sm:$0xff] %v1137_v49  ;;  %v1139_v53 = vadd.f32 %v2208_v7, %v981_v52  ;;  %v983_v54 = vpop.f32.mrb[15].mxu1 }
 0x29b   : > { %1170 = vst [vmem:[%s2216_s28 + $0xa8] sm:$0xff] %v1138_v51  ;;  %v1140_v55 = vadd.f32 %v2212_v14, %v983_v54 }
 0x29c   : > { %1171 = vst [vmem:[%s2216_s28 + $0xb0] sm:$0xff] %v1139_v53 }
 0x29d   : > { %1172 = vst [vmem:[%s2216_s28 + $0xb8] sm:$0xff] %v1140_v55 }
 0x29f   : > { %v987_v56 = vpop.f32.mrb[16].mxu1 }
 0x2a0   : > { %v1141_v57 = vadd.f32 %v2208_v7, %v987_v56  ;;  %v989_v58 = vpop.f32.mrb[17].mxu1 }
 0x2a1   : > { %v1142_v59 = vadd.f32 %v2212_v14, %v989_v58  ;;  %v991_v60 = vpop.f32.mrb[18].mxu1 }
 0x2a2   : > { %1173 = vst [vmem:[%s2216_s28 + $0xc0] sm:$0xff] %v1141_v57  ;;  %v1143_v61 = vadd.f32 %v2208_v7, %v991_v60  ;;  %v993_v62 = vpop.f32.mrb[19].mxu1 }
 0x2a3   : > { %1174 = vst [vmem:[%s2216_s28 + $0xc8] sm:$0xff] %v1142_v59  ;;  %v1144_v63 = vadd.f32 %v2212_v14, %v993_v62 }
 0x2a4   : > { %1175 = vst [vmem:[%s2216_s28 + $0xd0] sm:$0xff] %v1143_v61 }
 0x2a5   : > { %1176 = vst [vmem:[%s2216_s28 + $0xd8] sm:$0xff] %v1144_v63 }
 0x2a7   : > { %v997_v1 = vpop.f32.mrb[20].mxu1 }
 0x2a8   : > { %v1145_v2 = vadd.f32 %v2208_v7, %v997_v1  ;;  %v999_v3 = vpop.f32.mrb[21].mxu1 }
 0x2a9   : > { %v1146_v4 = vadd.f32 %v2212_v14, %v999_v3  ;;  %v1001_v5 = vpop.f32.mrb[22].mxu1 }
 0x2aa   : > { %1177 = vst [vmem:[%s2216_s28 + $0xe0] sm:$0xff] %v1145_v2  ;;  %v1147_v6 = vadd.f32 %v2208_v7, %v1001_v5  ;;  %v1003_v8 = vpop.f32.mrb[23].mxu1 }
 0x2ab   : > { %1178 = vst [vmem:[%s2216_s28 + $0xe8] sm:$0xff] %v1146_v4  ;;  %v1148_v15 = vadd.f32 %v2212_v14, %v1003_v8 }
 0x2ac   : > { %1179 = vst [vmem:[%s2216_s28 + $0xf0] sm:$0xff] %v1147_v6 }
 0x2ad   : > { %1180 = vst [vmem:[%s2216_s28 + $0xf8] sm:$0xff] %v1148_v15 }
 0x2ae   : > { %1763 = shalt.err (!%p1760_p0)
}
 0x2af   : > { %s1764_s15 = scalar_lea.hbm %s2281_s12, 4096  ;;  %s1768_s6 = scalar_lea.hbm %s2341_s5, 8192 }
 0x2b0   : > { %p1765_p4 = scmp.ne.s32.totalorder %s2281_s12, %s1764_s15  ;;  %p1769_p12 = scmp.lt.u32.totalorder %s2281_s12, %s2341_s5 }
 0x2b1   : > { %p1770_p1 = scmp.lt.u32.totalorder %s1768_s6, %s1764_s15  ;;  %p1772_p2 = scmp.lt.u32.totalorder %s1764_s15, %s2281_s12 }
 0x2b2   : > { %p1766_p13 = pnand %p1765_p4, %p2061_p5 }
 0x2b3   : > { %p1771_p11 = por %p1770_p1, %p1769_p12 }
 0x2b4   : > { %p1767_p6 = pneg %p1766_p13 }
 0x2b5   : > { %p1773_p8 = por %p1772_p2, %p1771_p11 }
 0x2b7   : > { %p1774_p10 = pnand %p1773_p8, %p1767_p6 }
 0x2b9   : > { %1777 = shalt.err (!%p1774_p10)
}
 0x2ba   : > { %s1851_s28 = smov 256   ;;  %s1852_s30 = smov 16  }
 0x2bb   : > { %1446 = dma.vmem_to_hbm [thread:$0]  (%p2061_p5), %s2283_s11, 4096, %s2281_s12, %s1182_s21, %s1851_s28, %s1851_s28, %s1852_s30  }
 0x2bc PF: > { %s2363_s13 = sld [smem:[#allocation17_spill]]  ;;  %s2364_s7 = sld [smem:[#allocation18_spill]] }
 0x2bd   : > { %p2366_p7 = scmp.ge.s32.totalorder %s1840_s23, 2 }
 0x2c2   : > { %s1211_s10 = sand.u32 1, %s2363_s13   ;;  %p2365_p3 = scmp.ne.s32.totalorder %s2364_s7, 0 }
 0x2c3   : > { %s1212_s18 = scalar_lea.sflag [#allocation5], %s1211_s10 }
 0x2c4   : > { %p1466_p9 = pnand %p2366_p7, %p2365_p3 }
 0x2c6   : > { %1815 = dma.done.wait (!%p1466_p9), %s1212_s18, 4096  }
 0x2c7   : > { %1817 = vsyncadd (!%p1466_p9), %s1212_s18, 4294963200  ;;  %s23_s23 = sadd.s32 1, %s1840_s23   ;;  %s2367_s18 = smov %s1824_s19 }
 0x2c8   : > { %p20_p0 = scmp.ge.s32.totalorder %s23_s23, 4   ;;  %s2368_s19 = smov %s1828_s20 }
 0x2c9   : > { %s2369_s20 = smov %s2070_s25  ;;  %s2370_s21 = smov %s1836_s22 }
 0x2ca   : > { %s2371_s22 = smov %s2373_s24  ;;  %22 = sbr.rel (!%p20_p0) target bundleno = 8 (0x8), region = 112 }
 0x2d1   :  { %1217 = vsyncpa [#allocation4], 1 }
 0x2d2   :  { %1219 = vsyncpa [#allocation4 + $0x1], 1 }
 0x2d3   :  { %1220 = vsyncpa [#allocation7], 1 }
 0x2d4   :  { %1221 = vsyncpa [#allocation10], 1 }
 0x2d5   :  { %1222 = vsyncpa [#allocation5], 1 }
 0x2d6   :  { %1224 = vsyncpa [#allocation5 + $0x1], 1 }

</bundles_post_ra>
